<compile_context>
chip_gen: v6e
topology: v6e:2x2x1
jax: 0.10.0
libtpu: 0.0.40
codegen_flags: <defaults>
</compile_context>

<pallas_src>
import jax
import jax.numpy as jnp
from jax.experimental import pallas as pl
from jax.experimental.pallas import tpu as pltpu


def dqn_kernel(x_ref, w1_ref, b1_ref, w2_ref, b2_ref, out_ref):
    # x:  (TB, S)  f32     w1: (S, 64)  bf16   b1: (1, 64) f32
    # w2: (64, A)  bf16    b2: (1, A)   f32    out: (TB, A) f32
    # Cast to bf16 in-kernel so the HBM stream is a single f32 read of x.
    x = x_ref[...].astype(jnp.bfloat16)

    # Layer 1 on the MXU (bf16 operands, f32 accumulation); bias/ReLU in f32.
    h = jnp.dot(x, w1_ref[...], preferred_element_type=jnp.float32)
    h = jnp.maximum(h + b1_ref[...], 0.0)

    # Layer 2: bf16 operands too (halves MXU passes); epilogue stays f32.
    y = jnp.dot(h.astype(jnp.bfloat16), w2_ref[...],
                preferred_element_type=jnp.float32)
    out_ref[...] = (y + b2_ref[...]).astype(out_ref.dtype)


def _round_up(n, m):
    return ((n + m - 1) // m) * m


def _cdiv(a, b):
    return (a + b - 1) // b


def dqn_forward(x, w1, b1, w2, b2, *, block_b=16384, min_pallas_batch=4096,
                force_pallas=False):
    """relu(x @ w1 + b1) @ w2 + b2.  x: (B, S) -> (B, action_size) f32."""
    B, S = x.shape
    hidden = w1.shape[1]
    A = w2.shape[1]

    w1b = w1.astype(jnp.bfloat16)
    w2b = w2.astype(jnp.bfloat16)
    b1f = b1.reshape(1, hidden).astype(jnp.float32)
    b2f = b2.reshape(1, A).astype(jnp.float32)

    # DQN-typical small batches: the whole forward is smaller than one grid
    # step's fixed overhead -> let XLA fuse the two GEMMs instead.
    if not force_pallas and B < min_pallas_batch:
        h = jnp.maximum(
            jnp.dot(x.astype(jnp.bfloat16), w1b,
                    preferred_element_type=jnp.float32) + b1f, 0.0)
        return jnp.dot(h.astype(jnp.bfloat16), w2b,
                       preferred_element_type=jnp.float32) + b2f

    # Batch tile: multiple of 16 (bf16 sublane packing after the in-kernel
    # cast), large to amortize per-step overhead, but capped so the grid still
    # has >= 2 steps when the batch can be split (v7x megacore sharding).
    tb = min(_round_up(block_b, 16), _round_up(B, 16))
    if _cdiv(B, tb) < 2 and B > 32:
        tb = _round_up(_cdiv(B, 2), 16)
    grid_b = _cdiv(B, tb)

    cost = pl.CostEstimate(
        flops=2 * B * (S * hidden + hidden * A),
        transcendentals=0,
        bytes_accessed=(4 * B * S + 4 * B * A
                        + 2 * S * hidden + 4 * hidden
                        + 2 * hidden * A + 4 * A),
    )

    out = pl.pallas_call(
        dqn_kernel,
        out_shape=jax.ShapeDtypeStruct((B, A), jnp.float32),
        grid=(grid_b,),
        in_specs=[
            pl.BlockSpec((tb, S), lambda i: (i, 0)),       # x: tiled over batch
            pl.BlockSpec((S, hidden), lambda i: (0, 0)),   # weights/biases stay
            pl.BlockSpec((1, hidden), lambda i: (0, 0)),   # VMEM-resident
            pl.BlockSpec((hidden, A), lambda i: (0, 0)),   # (DMA'd once)
            pl.BlockSpec((1, A), lambda i: (0, 0)),
        ],
        out_specs=pl.BlockSpec((tb, A), lambda i: (i, 0)),
        compiler_params=pltpu.CompilerParams(
            # Batch tiles are independent -> megacore sharding on v7x.
            dimension_semantics=("parallel",),
            # Headroom for lane-padded f32 x/out tiles, double-buffered.
            vmem_limit_bytes=48 * 1024 * 1024,
        ),
        cost_estimate=cost,
    )(x.astype(jnp.float32), w1b, b1f, w2b, b2f)

    return out


def init_dqn_params(key, state_size, hidden=64, action_size=2):
    """Mimics torch.nn.Linear default init (uniform +/- 1/sqrt(fan_in)).
    Weights stored as (in, out) so the kernel computes x @ W + b."""
    k1, k2, k3, k4 = jax.random.split(key, 4)
    bound1 = 1.0 / jnp.sqrt(state_size)
    w1 = jax.random.uniform(k1, (state_size, hidden), jnp.float32, -bound1, bound1)
    b1 = jax.random.uniform(k2, (1, hidden), jnp.float32, -bound1, bound1)
    bound2 = 1.0 / jnp.sqrt(hidden)
    w2 = jax.random.uniform(k3, (hidden, action_size), jnp.float32, -bound2, bound2)
    b2 = jax.random.uniform(k4, (1, action_size), jnp.float32, -bound2, bound2)
    return w1, b1, w2, b2


if __name__ == "__main__":
    state_size = 16
    action_size = 2
    batch = 200  # not a multiple of the tile -> exercises the masked boundary block

    key = jax.random.PRNGKey(0)
    kx, kp = jax.random.split(key)

    x = jax.random.normal(kx, (batch, state_size), jnp.float32)
    w1, b1, w2, b2 = init_dqn_params(kp, state_size, 64, action_size)

    # force_pallas=True so this small demo still exercises the kernel
    # (tile auto-shrinks to ~half the batch -> 2 grid steps, 2nd one partial).
    out = dqn_forward(x, w1, b1, w2, b2, force_pallas=True)
    out = jax.block_until_ready(out)

    # Reference matched to the kernel's internal dtypes (bf16 MXU, f32 acc/epilogue).
    h_ref = jnp.maximum(
        jnp.dot(x.astype(jnp.bfloat16), w1.astype(jnp.bfloat16),
                preferred_element_type=jnp.float32) + b1,
        0.0,
    )
    ref = jnp.dot(h_ref.astype(jnp.bfloat16), w2.astype(jnp.bfloat16),
                  preferred_element_type=jnp.float32) + b2

    # Full-f32 reference: loose sanity check (bf16 operands cost ~1e-2 rel).
    ref_f32 = jnp.maximum(x @ w1 + b1, 0.0) @ w2 + b2

    assert out.shape == (batch, action_size)
    assert jnp.allclose(out, ref, atol=1e-3, rtol=1e-3)
    assert jnp.allclose(out, ref_f32, atol=1e-1, rtol=1e-1)

    print("KERNEL_OK")
</pallas_src>

<mosaic_0001>
module attributes {stable_mosaic.version = 11 : i64} {
  func.func @dqn_kernel(%arg0: i32, %arg1: memref<112x16xf32, #tpu.memory_space<vmem>>, %arg2: memref<16x64xbf16, #tpu.memory_space<vmem>>, %arg3: memref<1x64xf32, #tpu.memory_space<vmem>>, %arg4: memref<64x2xbf16, #tpu.memory_space<vmem>>, %arg5: memref<1x2xf32, #tpu.memory_space<vmem>>, %arg6: memref<112x2xf32, #tpu.memory_space<vmem>>) attributes {dimension_semantics = [#tpu.dimension_semantics<parallel>], iteration_bounds = array<i64: 2>, scalar_prefetch = 0 : i64, scratch_operands = 0 : i64, tpu.core_type = #tpu.core_type<tc>, window_params = [{transform_indices = @transform_0, window_bounds = array<i64: 112, 16>}, {pipeline_mode = #tpu.pipeline_mode<synchronous>, transform_indices = @transform_1, window_bounds = array<i64: 16, 64>}, {pipeline_mode = #tpu.pipeline_mode<synchronous>, transform_indices = @transform_2, window_bounds = array<i64: 1, 64>}, {pipeline_mode = #tpu.pipeline_mode<synchronous>, transform_indices = @transform_3, window_bounds = array<i64: 64, 2>}, {pipeline_mode = #tpu.pipeline_mode<synchronous>, transform_indices = @transform_4, window_bounds = array<i64: 1, 2>}, {transform_indices = @transform_5, window_bounds = array<i64: 112, 2>}]} {
    %c0 = arith.constant 0 : index
    %c0_0 = arith.constant 0 : index
    %0 = vector.load %arg1[%c0, %c0_0] : memref<112x16xf32, #tpu.memory_space<vmem>>, vector<112x16xf32>
    %1 = arith.truncf %0 : vector<112x16xf32> to vector<112x16xbf16>
    %c0_1 = arith.constant 0 : index
    %c0_2 = arith.constant 0 : index
    %2 = vector.load %arg2[%c0_1, %c0_2] : memref<16x64xbf16, #tpu.memory_space<vmem>>, vector<16x64xbf16>
    %cst = arith.constant dense<0.000000e+00> : vector<112x64xf32>
    %3 = tpu.matmul %1, %2, %cst {dimension_numbers = #tpu.dot_dimension_numbers<[1], [0], [0], [1], [0, 0, 1, 1], [], []>} : vector<112x16xbf16>, vector<16x64xbf16>, vector<112x64xf32> -> vector<112x64xf32>
    %c0_3 = arith.constant 0 : index
    %c0_4 = arith.constant 0 : index
    %4 = vector.load %arg3[%c0_3, %c0_4] : memref<1x64xf32, #tpu.memory_space<vmem>>, vector<1x64xf32>
    %5 = vector.broadcast %4 : vector<1x64xf32> to vector<112x64xf32>
    %6 = arith.addf %3, %5 : vector<112x64xf32>
    %cst_5 = arith.constant 0.000000e+00 : f32
    %7 = vector.broadcast %cst_5 : f32 to vector<112x64xf32>
    %8 = arith.maximumf %6, %7 : vector<112x64xf32>
    %9 = arith.truncf %8 : vector<112x64xf32> to vector<112x64xbf16>
    %c0_6 = arith.constant 0 : index
    %c0_7 = arith.constant 0 : index
    %10 = vector.load %arg4[%c0_6, %c0_7] : memref<64x2xbf16, #tpu.memory_space<vmem>>, vector<64x2xbf16>
    %cst_8 = arith.constant dense<0.000000e+00> : vector<112x2xf32>
    %11 = tpu.matmul %9, %10, %cst_8 {dimension_numbers = #tpu.dot_dimension_numbers<[1], [0], [0], [1], [0, 0, 1, 1], [], []>} : vector<112x64xbf16>, vector<64x2xbf16>, vector<112x2xf32> -> vector<112x2xf32>
    %c0_9 = arith.constant 0 : index
    %c0_10 = arith.constant 0 : index
    %12 = vector.load %arg5[%c0_9, %c0_10] : memref<1x2xf32, #tpu.memory_space<vmem>>, vector<1x2xf32>
    %13 = vector.broadcast %12 : vector<1x2xf32> to vector<112x2xf32>
    %14 = arith.addf %11, %13 : vector<112x2xf32>
    %c0_11 = arith.constant 0 : index
    %c0_12 = arith.constant 0 : index
    %15 = vector.load %arg6[%c0_11, %c0_12] : memref<112x2xf32, #tpu.memory_space<vmem>>, vector<112x2xf32>
    tpu.vector_store %arg6[%c0_11, %c0_12], %14 {strides = array<i32>} : memref<112x2xf32, #tpu.memory_space<vmem>>, vector<112x2xf32>,
    return
  }
  func.func @transform_0(%arg0: i32) -> (i32, i32) {
    %c0_i32 = arith.constant 0 : i32
    %c0_i32_0 = arith.constant 0 : i32
    return %arg0, %c0_i32 : i32, i32
  }
  func.func @transform_1(%arg0: i32) -> (i32, i32) {
    %c0_i32 = arith.constant 0 : i32
    %c0_i32_0 = arith.constant 0 : i32
    %c0_i32_1 = arith.constant 0 : i32
    return %c0_i32, %c0_i32_0 : i32, i32
  }
  func.func @transform_2(%arg0: i32) -> (i32, i32) {
    %c0_i32 = arith.constant 0 : i32
    %c0_i32_0 = arith.constant 0 : i32
    %c0_i32_1 = arith.constant 0 : i32
    return %c0_i32, %c0_i32_0 : i32, i32
  }
  func.func @transform_3(%arg0: i32) -> (i32, i32) {
    %c0_i32 = arith.constant 0 : i32
    %c0_i32_0 = arith.constant 0 : i32
    %c0_i32_1 = arith.constant 0 : i32
    return %c0_i32, %c0_i32_0 : i32, i32
  }
  func.func @transform_4(%arg0: i32) -> (i32, i32) {
    %c0_i32 = arith.constant 0 : i32
    %c0_i32_0 = arith.constant 0 : i32
    %c0_i32_1 = arith.constant 0 : i32
    return %c0_i32, %c0_i32_0 : i32, i32
  }
  func.func @transform_5(%arg0: i32) -> (i32, i32) {
    %c0_i32 = arith.constant 0 : i32
    %c0_i32_0 = arith.constant 0 : i32
    return %arg0, %c0_i32 : i32, i32
  }
}

</mosaic_0001>

<bundles_post_ra>
// kernel: tpu_custom_call.1
= control target key start
LH: loop header
LB: loop body
LE: loop exit
PB: predicated region body
PF: predicated region fallthrough
CT: control target
= control target key end

     0   :  { %s1195_s18 = smov 0   ;;  %s1197_s19 = smov 0   ;;  %s1454_s0 = inlined_call_operand.vmem [shape: f32[200,16], index: 0, kind: input, shape index: {}]   ;;  %s1455_s1 = inlined_call_operand.vmem [shape: bf16[16,64], index: 1, kind: input, shape index: {}]   ;;  %s1456_s2 = inlined_call_operand.vmem [shape: f32[1,64], index: 2, kind: input, shape index: {}]   ;;  %s1457_s3 = inlined_call_operand.vmem [shape: bf16[64,2], index: 3, kind: input, shape index: {}]   ;;  %s1458_s4 = inlined_call_operand.vmem [shape: f32[1,2], index: 4, kind: input, shape index: {}]   ;;  %s1459_s5 = inlined_call_operand.vmem [shape: f32[200,2], index: 5, kind: output, shape index: {}]  }
   0x1   :  { %s1199_s20 = smov 0  }
   0x2 LB: > { %s1208_s21 = sadd.s32 4294967295, %s1129_s20   ;;  %s1210_s22 = sadd.s32 1, %s1129_s20   ;;  %s1129_s20 = sphi %s1199_s20, %s1466_s20   ;;  %s1125_s19 = sphi %s1197_s19, %s1465_s19   ;;  %s1121_s18 = sphi %s1195_s18, %s1464_s18  }
   0x3   : > { %s129_s23 = ssub.s32 %s1129_s20, %s1210_s22  ;;  %s132_s24 = sadd.s32 1, %s1125_s19 }
   0x4   : > { %p130_p0 = scmp.eq.s32.totalorder %s129_s23, 0  ;;  %p142_p1 = scmp.ne.s32.totalorder %s1125_s19, %s1121_s18 }
   0x5   : > { %p143_p2 = scmp.eq.s32.totalorder %s1208_s21, 1  ;;  %p853_p3 = scmp.ge.s32.totalorder %s1129_s20, 1 }
   0x6   : > { %s1218_s25 = scalar_select %p130_p0, %s1125_s19, %s132_s24  }
   0x7   : > { %p1220_p4 = por %p143_p2, %p142_p1  ;;  %p196_p5 = scmp.lt.s32.totalorder %s1129_s20, 3 }
   0x9   : > { %p197_p6 = pnand %p853_p3, %p196_p5 }
   0xa   : > { %s1229_s29 = smul.u32 (!%p197_p6), 14, %s1208_s21  ;;  %s224_s24 = sand.u32 (!%p197_p6), 1, %s1121_s18  }
   0xb   : > { %200 = sbr.rel (%p197_p6) target bundleno = 527 (0x20f), region = 40 }
   0xc   : > { %p232_p7 = scmp.lt.s32.totalorder (!%p197_p6), %s1229_s29, 24  ;;  %s974_s27 = smul.u32 (!%p197_p6), 112, %s224_s24 }
   0xe   : > { %s1333_s6 = scalar_lea.vmem (!%p197_p6), [#allocation2], %s974_s27  }
  0x10   : > { %v1066_v0 = vld [vmem:[%s1455_s1] sm:$0xff]   ;;  %v1163_v1 = vmov 0.0   ;;  %v1067_v2 = vld [vmem:[%s1457_s3 + $0x18] sm:$0xff]   ;;  %vm1164_vm0 = vmmov 0   ;;  %s233_s7 = scalar_select %p232_p7, %s1229_s29, 24  ;;  %vm283_vm1 = vcmask 130048  }
  0x11   : > { %908 = vmatprep.subr.bf16.mxu0 %v1163_v1  ;;  %938 = vmatprep.subr.bf16.mxu1 %v1163_v1  ;;  %v1068_v24 = vld [vmem:[%s1457_s3 + $0x10] sm:$0xff]   ;;  %v1069_v25 = vld [vmem:[%s1457_s3 + $0x8] sm:$0xff]   ;;  %v1070_v26 = vld [vmem:[%s1457_s3] sm:$0xff]   ;;  %vm454_vm2 = vcmask 523264   ;;  %vm565_vm3 = vcmask 15360   ;;  %s588_s18 = ssub.s32 (%p1220_p4), 25, %s1229_s29 }
  0x12   : > { %909 = vmatpush3.bf16.msra.mxu0 %v1066_v0  ;;  %910 = vmatprep.mubr.msk.bf16.mxu0 %vm1164_vm0, %v1163_v1  ;;  %s854_s8 = sshll.u32 %s233_s7, 3  ;;  %v1294_v27 = vld [vmem:[%s1456_s2] ss:$0 sm:$0xff]  ;;  %s888_s7 = smul.u32 (%p1220_p4), 112, %s1208_s21 }
  0x13   : > { %939 = vmatpush3.bf16.msra.mxu1 %v1067_v2  ;;  %946 = vmatprep.mubr.msk.bf16.mxu1 %vm1164_vm0, %v1163_v1  ;;  %s1245_s11 = scalar_lea.vmem %s1454_s0, %s854_s8  ;;  %p589_p8 = scmp.lt.s32.totalorder (%p1220_p4), %s588_s18, 14 }
  0x14   : > { %940 = vmatprep.subr.bf16.mxu1 %v1163_v1  ;;  %v247_v3 = vld [vmem:[%s1245_s11] sm:$0xff]  ;;  %v248_v4 = vld [vmem:[%s1245_s11 + $0x8] sm:$0xff]  ;;  %v249_v6 = vld [vmem:[%s1245_s11 + $0x10] sm:$0xff]  ;;  %s1370_s10 = scalar_lea.vmem (%p1220_p4), %s1459_s5, %s888_s7  }
  0x15   : > { %v261_v5 = vpack.c.bf16 %v248_v4, %v247_v3  ;;  %v250_v7 = vld [vmem:[%s1245_s11 + $0x18] sm:$0xff]  ;;  %v251_v9 = vld [vmem:[%s1245_s11 + $0x20] sm:$0xff]  ;;  %v252_v10 = vld [vmem:[%s1245_s11 + $0x28] sm:$0xff] }
  0x16   : > { %v262_v8 = vpack.c.bf16 %v250_v7, %v249_v6  ;;  %v263_v11 = vpack.c.bf16 %v252_v10, %v251_v9  ;;  %v253_v12 = vld [vmem:[%s1245_s11 + $0x30] sm:$0xff]  ;;  %v254_v13 = vld [vmem:[%s1245_s11 + $0x38] sm:$0xff]  ;;  %v255_v15 = vld [vmem:[%s1245_s11 + $0x40] sm:$0xff] }
  0x17   : > { %911 = vmatmul.mubr.msk.bf16.vlgmr.msra.gmra.mxu0 %vm283_vm1, %v261_v5  ;;  %v264_v14 = vpack.c.bf16 %v254_v13, %v253_v12  ;;  %v256_v16 = vld [vmem:[%s1245_s11 + $0x48] sm:$0xff]  ;;  %v257_v18 = vld [vmem:[%s1245_s11 + $0x50] sm:$0xff]  ;;  %v258_v19 = vld [vmem:[%s1245_s11 + $0x58] sm:$0xff]  ;;  %941 = vmatpush3.bf16.msra.mxu1 %v1068_v24 }
  0x18   : > { %914 = vmatprep.mubr.msk.bf16.mxu0 %vm1164_vm0, %v1163_v1  ;;  %v265_v17 = vpack.c.bf16 %v256_v16, %v255_v15  ;;  %v266_v20 = vpack.c.bf16 %v258_v19, %v257_v18  ;;  %v259_v21 = vld [vmem:[%s1245_s11 + $0x60] sm:$0xff]  ;;  %v260_v22 = vld [vmem:[%s1245_s11 + $0x68] sm:$0xff]  ;;  %942 = vmatprep.subr.bf16.mxu1 %v1163_v1 }
  0x19   : > { %v267_v23 = vpack.c.bf16 %v260_v22, %v259_v21 }
  0x1b   : > { %943 = vmatpush3.bf16.msra.mxu1 %v1069_v25 }
  0x1c   : > { %944 = vmatprep.subr.bf16.mxu1 %v1163_v1 }
  0x1f   : > { %915 = vmatmul.mubr.msk.bf16.gmra.mxu0 %vm283_vm1, %v262_v8  ;;  %945 = vmatpush3.bf16.msra.mxu1 %v1070_v26 }
  0x20   : > { %918 = vmatprep.mubr.msk.bf16.mxu0 %vm1164_vm0, %v1163_v1 }
  0x27   : > { %919 = vmatmul.mubr.msk.bf16.gmra.mxu0 %vm283_vm1, %v263_v11 }
  0x28   : > { %922 = vmatprep.mubr.msk.bf16.mxu0 %vm1164_vm0, %v1163_v1 }
  0x2f   : > { %923 = vmatmul.mubr.msk.bf16.gmra.mxu0 %vm283_vm1, %v264_v14 }
  0x30   : > { %926 = vmatprep.mubr.msk.bf16.mxu0 %vm1164_vm0, %v1163_v1 }
  0x37   : > { %927 = vmatmul.mubr.msk.bf16.gmra.mxu0 %vm283_vm1, %v265_v17 }
  0x38   : > { %930 = vmatprep.mubr.msk.bf16.mxu0 %vm1164_vm0, %v1163_v1 }
  0x3f   : > { %931 = vmatmul.mubr.msk.bf16.gmra.mxu0 %vm283_vm1, %v266_v20 }
  0x40   : > { %934 = vmatprep.mubr.msk.bf16.mxu0 %vm1164_vm0, %v1163_v1 }
  0x47   : > { %935 = vmatmul.mubr.msk.bf16.gmra.mxu0 %vm283_vm1, %v267_v23 }
  0xd7   : > { %v339_v28 = vpop.f32.mrf.mxu0 }
  0xd8   : > { %v340_v30 = vadd.f32 %v1294_v27, %v339_v28 }
  0xd9   : > { %v912_v29 = vpop.f32.mrf.mxu0 }
  0xda   : > { %v394_v34 = vmax.f32 %v340_v30, 0.0  ;;  %v864_v29 = vld [vmem:[%s1458_s4] ss:$0 sm:$0xff] }
  0xdb   : > { %v342_v31 = vpop.f32.mrf.mxu0 }
  0xdc   : > { %v343_v32 = vadd.f32 %v1294_v27, %v342_v31 }
  0xdd   : > { %v913_v33 = vpop.f32.mrf.mxu0 }
  0xde   : > { %v395_v35 = vmax.f32 %v343_v32, 0.0 }
  0xdf   : > { %v347_v36 = vpop.f32.mrf.mxu0 }
  0xe0   : > { %v408_v37 = vpack.c.bf16 %v395_v35, %v394_v34  ;;  %v348_v39 = vadd.f32 %v1294_v27, %v347_v36 }
  0xe1   : > { %v916_v38 = vpop.f32.mrf.mxu0 }
  0xe2   : > { %947 = vmatmul.mubr.msk.bf16.vlgmr.msra.gmra.mxu1 %vm454_vm2, %v408_v37  ;;  %v396_v43 = vmax.f32 %v348_v39, 0.0 }
  0xe3   : > { %v350_v40 = vpop.f32.mrf.mxu0  ;;  %950 = vmatprep.mubr.msk.bf16.mxu1 %vm1164_vm0, %v1163_v1 }
  0xe4   : > { %v351_v41 = vadd.f32 %v1294_v27, %v350_v40 }
  0xe5   : > { %v917_v42 = vpop.f32.mrf.mxu0 }
  0xe6   : > { %v397_v44 = vmax.f32 %v351_v41, 0.0 }
  0xe7   : > { %v355_v45 = vpop.f32.mrf.mxu0 }
  0xe8   : > { %v409_v46 = vpack.c.bf16 %v397_v44, %v396_v43  ;;  %v356_v48 = vadd.f32 %v1294_v27, %v355_v45 }
  0xe9   : > { %v920_v47 = vpop.f32.mrf.mxu0 }
  0xea   : > { %951 = vmatmul.mubr.msk.bf16.gmra.mxu1 %vm454_vm2, %v409_v46  ;;  %v398_v52 = vmax.f32 %v356_v48, 0.0 }
  0xeb   : > { %v358_v49 = vpop.f32.mrf.mxu0  ;;  %954 = vmatprep.mubr.msk.bf16.mxu1 %vm1164_vm0, %v1163_v1 }
  0xec   : > { %v359_v50 = vadd.f32 %v1294_v27, %v358_v49 }
  0xed   : > { %v921_v51 = vpop.f32.mrf.mxu0 }
  0xee   : > { %v399_v53 = vmax.f32 %v359_v50, 0.0 }
  0xef   : > { %v363_v54 = vpop.f32.mrf.mxu0 }
  0xf0   : > { %v410_v55 = vpack.c.bf16 %v399_v53, %v398_v52  ;;  %v364_v57 = vadd.f32 %v1294_v27, %v363_v54 }
  0xf1   : > { %v924_v56 = vpop.f32.mrf.mxu0 }
  0xf2   : > { %955 = vmatmul.mubr.msk.bf16.gmra.mxu1 %vm454_vm2, %v410_v55  ;;  %v400_v61 = vmax.f32 %v364_v57, 0.0 }
  0xf3   : > { %v366_v58 = vpop.f32.mrf.mxu0  ;;  %958 = vmatprep.mubr.msk.bf16.mxu1 %vm1164_vm0, %v1163_v1 }
  0xf4   : > { %v367_v59 = vadd.f32 %v1294_v27, %v366_v58 }
  0xf5   : > { %v925_v60 = vpop.f32.mrf.mxu0 }
  0xf6   : > { %v401_v62 = vmax.f32 %v367_v59, 0.0 }
  0xf7   : > { %v371_v63 = vpop.f32.mrf.mxu0 }
  0xf8   : > { %v411_v0 = vpack.c.bf16 %v401_v62, %v400_v61  ;;  %v372_v3 = vadd.f32 %v1294_v27, %v371_v63 }
  0xf9   : > { %v928_v2 = vpop.f32.mrf.mxu0 }
  0xfa   : > { %959 = vmatmul.mubr.msk.bf16.gmra.mxu1 %vm454_vm2, %v411_v0  ;;  %v402_v7 = vmax.f32 %v372_v3, 0.0 }
  0xfb   : > { %v374_v4 = vpop.f32.mrf.mxu0  ;;  %962 = vmatprep.mubr.msk.bf16.mxu1 %vm1164_vm0, %v1163_v1 }
  0xfc   : > { %v375_v5 = vadd.f32 %v1294_v27, %v374_v4 }
  0xfd   : > { %v929_v6 = vpop.f32.mrf.mxu0 }
  0xfe   : > { %v403_v8 = vmax.f32 %v375_v5, 0.0 }
  0xff   : > { %v379_v9 = vpop.f32.mrf.mxu0 }
 0x100   : > { %v412_v10 = vpack.c.bf16 %v403_v8, %v402_v7  ;;  %v380_v12 = vadd.f32 %v1294_v27, %v379_v9 }
 0x101   : > { %v932_v11 = vpop.f32.mrf.mxu0 }
 0x102   : > { %963 = vmatmul.mubr.msk.bf16.gmra.mxu1 %vm454_vm2, %v412_v10  ;;  %v404_v16 = vmax.f32 %v380_v12, 0.0 }
 0x103   : > { %v382_v13 = vpop.f32.mrf.mxu0  ;;  %966 = vmatprep.mubr.msk.bf16.mxu1 %vm1164_vm0, %v1163_v1 }
 0x104   : > { %v383_v14 = vadd.f32 %v1294_v27, %v382_v13 }
 0x105   : > { %v933_v15 = vpop.f32.mrf.mxu0 }
 0x106   : > { %v405_v17 = vmax.f32 %v383_v14, 0.0 }
 0x107   : > { %v387_v18 = vpop.f32.mrf.mxu0 }
 0x108   : > { %v413_v19 = vpack.c.bf16 %v405_v17, %v404_v16  ;;  %v388_v21 = vadd.f32 %v1294_v27, %v387_v18 }
 0x109   : > { %v936_v20 = vpop.f32.mrf.mxu0 }
 0x10a   : > { %967 = vmatmul.mubr.msk.bf16.gmra.mxu1 %vm454_vm2, %v413_v19  ;;  %v406_v25 = vmax.f32 %v388_v21, 0.0 }
 0x10b   : > { %v390_v22 = vpop.f32.mrf.mxu0  ;;  %970 = vmatprep.mubr.msk.bf16.mxu1 %vm1164_vm0, %v1163_v1 }
 0x10c   : > { %v391_v23 = vadd.f32 %v1294_v27, %v390_v22 }
 0x10d   : > { %v937_v24 = vpop.f32.mrf.mxu0 }
 0x10e   : > { %v407_v26 = vmax.f32 %v391_v23, 0.0 }
 0x110   : > { %v414_v28 = vpack.c.bf16 %v407_v26, %v406_v25 }
 0x112   : > { %971 = vmatmul.mubr.msk.bf16.gmra.mxu1 %vm454_vm2, %v414_v28 }
 0x1a2   : > { %v510_v30 = vpop.f32.mrf.mxu1 }
 0x1a3   : > { %v511_v31 = vadd.f32 %v864_v29, %v510_v30 }
 0x1a4   : > { %v948_v32 = vpop.f32.mrf.mxu1 }
 0x1a5   : > { %566 = vst.msk [vmem:[%s1333_s6] sm:$0xff] %vm565_vm3, %v511_v31 }
 0x1a6   : > { %v513_v1 = vpop.f32.mrf.mxu1 }
 0x1a7   : > { %v514_v27 = vadd.f32 %v864_v29, %v513_v1 }
 0x1a8   : > { %v949_v33 = vpop.f32.mrf.mxu1 }
 0x1a9   : > { %567 = vst.msk [vmem:[%s1333_s6 + $0x8] sm:$0xff] %vm565_vm3, %v514_v27 }
 0x1aa   : > { %v518_v34 = vpop.f32.mrf.mxu1 }
 0x1ab   : > { %v519_v35 = vadd.f32 %v864_v29, %v518_v34 }
 0x1ac   : > { %v952_v36 = vpop.f32.mrf.mxu1 }
 0x1ad   : > { %568 = vst.msk [vmem:[%s1333_s6 + $0x10] sm:$0xff] %vm565_vm3, %v519_v35 }
 0x1ae   : > { %v521_v37 = vpop.f32.mrf.mxu1 }
 0x1af   : > { %v522_v38 = vadd.f32 %v864_v29, %v521_v37 }
 0x1b0   : > { %v953_v39 = vpop.f32.mrf.mxu1 }
 0x1b1   : > { %569 = vst.msk [vmem:[%s1333_s6 + $0x18] sm:$0xff] %vm565_vm3, %v522_v38 }
 0x1b2   : > { %v526_v40 = vpop.f32.mrf.mxu1 }
 0x1b3   : > { %v527_v41 = vadd.f32 %v864_v29, %v526_v40 }
 0x1b4   : > { %v956_v42 = vpop.f32.mrf.mxu1 }
 0x1b5   : > { %570 = vst.msk [vmem:[%s1333_s6 + $0x20] sm:$0xff] %vm565_vm3, %v527_v41 }
 0x1b6   : > { %v529_v43 = vpop.f32.mrf.mxu1 }
 0x1b7   : > { %v530_v44 = vadd.f32 %v864_v29, %v529_v43 }
 0x1b8   : > { %v957_v45 = vpop.f32.mrf.mxu1 }
 0x1b9   : > { %571 = vst.msk [vmem:[%s1333_s6 + $0x28] sm:$0xff] %vm565_vm3, %v530_v44 }
 0x1ba   : > { %v534_v46 = vpop.f32.mrf.mxu1 }
 0x1bb   : > { %v535_v47 = vadd.f32 %v864_v29, %v534_v46 }
 0x1bc   : > { %v960_v48 = vpop.f32.mrf.mxu1 }
 0x1bd   : > { %572 = vst.msk [vmem:[%s1333_s6 + $0x30] sm:$0xff] %vm565_vm3, %v535_v47 }
 0x1be   : > { %v537_v49 = vpop.f32.mrf.mxu1 }
 0x1bf   : > { %v538_v50 = vadd.f32 %v864_v29, %v537_v49 }
 0x1c0   : > { %v961_v51 = vpop.f32.mrf.mxu1 }
 0x1c1   : > { %573 = vst.msk [vmem:[%s1333_s6 + $0x38] sm:$0xff] %vm565_vm3, %v538_v50 }
 0x1c2   : > { %v542_v52 = vpop.f32.mrf.mxu1 }
 0x1c3   : > { %v543_v53 = vadd.f32 %v864_v29, %v542_v52 }
 0x1c4   : > { %v964_v54 = vpop.f32.mrf.mxu1 }
 0x1c5   : > { %574 = vst.msk [vmem:[%s1333_s6 + $0x40] sm:$0xff] %vm565_vm3, %v543_v53 }
 0x1c6   : > { %v545_v55 = vpop.f32.mrf.mxu1 }
 0x1c7   : > { %v546_v56 = vadd.f32 %v864_v29, %v545_v55 }
 0x1c8   : > { %v965_v57 = vpop.f32.mrf.mxu1 }
 0x1c9   : > { %575 = vst.msk [vmem:[%s1333_s6 + $0x48] sm:$0xff] %vm565_vm3, %v546_v56 }
 0x1ca   : > { %v550_v58 = vpop.f32.mrf.mxu1 }
 0x1cb   : > { %v551_v59 = vadd.f32 %v864_v29, %v550_v58 }
 0x1cc   : > { %v968_v60 = vpop.f32.mrf.mxu1 }
 0x1cd   : > { %576 = vst.msk [vmem:[%s1333_s6 + $0x50] sm:$0xff] %vm565_vm3, %v551_v59 }
 0x1ce   : > { %v553_v61 = vpop.f32.mrf.mxu1 }
 0x1cf   : > { %v554_v62 = vadd.f32 %v864_v29, %v553_v61 }
 0x1d0   : > { %v969_v63 = vpop.f32.mrf.mxu1 }
 0x1d1   : > { %577 = vst.msk [vmem:[%s1333_s6 + $0x58] sm:$0xff] %vm565_vm3, %v554_v62 }
 0x1d2   : > { %v558_v0 = vpop.f32.mrf.mxu1 }
 0x1d3   : > { %v559_v2 = vadd.f32 %v864_v29, %v558_v0 }
 0x1d4   : > { %v972_v3 = vpop.f32.mrf.mxu1 }
 0x1d5   : > { %578 = vst.msk [vmem:[%s1333_s6 + $0x60] sm:$0xff] %vm565_vm3, %v559_v2  ;;  %586 = sbr.rel (!%p1220_p4) target bundleno = 527 (0x20f), region = 44 }
 0x1d6   : > { %v561_v4 = vpop.f32.mrf.mxu1 }
 0x1d7   : > { %v562_v5 = vadd.f32 %v864_v29, %v561_v4 }
 0x1d8   : > { %v973_v6 = vpop.f32.mrf.mxu1 }
 0x1d9   : > { %579 = vst.msk [vmem:[%s1333_s6 + $0x68] sm:$0xff] %vm565_vm3, %v562_v5 }
 0x1da   : > { %s1468_s18 = smov (!%p589_p8, %s588_s18), 14 }
 0x1db   : > { %s876_s11 = sshll.u32 %s1468_s18, 7 }
 0x1dc   : > { %p879_p9 = scmp.eq.s32.totalorder %s876_s11, 0 }
 0x1dd   : > { %1071 = sdivrem.u32 (!%p879_p9), %s1468_s18, 14 }
 0x1de   : > { %597 = sbr.rel (%p879_p9) target bundleno = 527 (0x20f), region = 48 }
 0x1e6   : > { %s1376_s26 = spop.drf %1071 }
 0x1e7   : > { %p880_p10 = scmp.le.s32.totalorder %s1376_s26, 0 }
 0x1e8   : > { %s1461_s21 = smov (!%p880_p10), %s1370_s10  ;;  %s1462_s29 = smov (!%p880_p10), %s1333_s6 }
 0x1e9   : > { %806 = sbr.rel (%p880_p10) target bundleno = 502 (0x1f6), region = 124  ;;  %s1385_s12 = smov (!%p880_p10), 0  }
 0x1ea   : > { %s1387_s13 = smov (!%p880_p10), 0  }
 0x1ee LB: >> { %v688_v7 = vld [vmem:[%s1137_s29] sm:$0xff]  ;;  %v690_v8 = vld [vmem:[%s1137_s29 + $0x8] sm:$0xff]  ;;  %v692_v9 = vld [vmem:[%s1137_s29 + $0x10] sm:$0xff]  ;;  %s716_s14 = sadd.s32 1, %s1141_s12  ;;  %s682_s13 = sadd.s32 1, %s1145_s13   ;;  %s1145_s13 = sphi %s1387_s13, %s682_s13   ;;  %s1141_s12 = sphi %s1385_s12, %s1463_s12   ;;  %s1137_s29 = sphi %s1462_s29, %s721_s29   ;;  %s1133_s21 = sphi %s1461_s21, %s722_s21  }
 0x1ef   : >> { %689 = vst [vmem:[%s1133_s21] sm:$0xff] %v688_v7  ;;  %691 = vst [vmem:[%s1133_s21 + $0x8] sm:$0xff] %v690_v8  ;;  %v694_v10 = vld [vmem:[%s1137_s29 + $0x18] sm:$0xff]  ;;  %v696_v11 = vld [vmem:[%s1137_s29 + $0x20] sm:$0xff]  ;;  %p717_p11 = scmp.ge.s32.totalorder %s716_s14, %s1376_s26  ;;  %p681_p12 = scmp.ge.s32.totalorder %s682_s13, %s1376_s26 }
 0x1f0   : >> { %693 = vst [vmem:[%s1133_s21 + $0x10] sm:$0xff] %v692_v9  ;;  %v698_v12 = vld [vmem:[%s1137_s29 + $0x28] sm:$0xff]  ;;  %695 = vst [vmem:[%s1133_s21 + $0x18] sm:$0xff] %v694_v10  ;;  %v700_v13 = vld [vmem:[%s1137_s29 + $0x30] sm:$0xff] }
 0x1f1   : >> { %697 = vst [vmem:[%s1133_s21 + $0x20] sm:$0xff] %v696_v11  ;;  %699 = vst [vmem:[%s1133_s21 + $0x28] sm:$0xff] %v698_v12  ;;  %v702_v14 = vld [vmem:[%s1137_s29 + $0x38] sm:$0xff]  ;;  %v704_v15 = vld [vmem:[%s1137_s29 + $0x40] sm:$0xff]  ;;  %s1470_s14 = smov (%p717_p11, %s716_s14), 0  ;;  %684 = sbr.rel (!%p681_p12) target bundleno = 494 (0x1ee), region = 130 }
 0x1f2   : >> { %701 = vst [vmem:[%s1133_s21 + $0x30] sm:$0xff] %v700_v13  ;;  %703 = vst [vmem:[%s1133_s21 + $0x38] sm:$0xff] %v702_v14  ;;  %v706_v16 = vld [vmem:[%s1137_s29 + $0x48] sm:$0xff]  ;;  %v708_v17 = vld [vmem:[%s1137_s29 + $0x50] sm:$0xff]  ;;  %s719_s15 = smul.u32 112, %s1470_s14  ;;  %s1463_s12 = smov %s1470_s14 }
 0x1f3   : >> { %705 = vst [vmem:[%s1133_s21 + $0x40] sm:$0xff] %v704_v15  ;;  %v710_v18 = vld [vmem:[%s1137_s29 + $0x58] sm:$0xff]  ;;  %707 = vst [vmem:[%s1133_s21 + $0x48] sm:$0xff] %v706_v16  ;;  %v712_v19 = vld [vmem:[%s1137_s29 + $0x60] sm:$0xff] }
 0x1f4   : >> { %709 = vst [vmem:[%s1133_s21 + $0x50] sm:$0xff] %v708_v17  ;;  %711 = vst [vmem:[%s1133_s21 + $0x58] sm:$0xff] %v710_v18  ;;  %v714_v20 = vld [vmem:[%s1137_s29 + $0x68] sm:$0xff]  ;;  %s721_s29 = scalar_lea.vmem %s1333_s6, %s719_s15 [#allocation2]  }
 0x1f5   : >> { %713 = vst [vmem:[%s1133_s21 + $0x60] sm:$0xff] %v712_v19  ;;  %715 = vst [vmem:[%s1133_s21 + $0x68] sm:$0xff] %v714_v20  ;;  %s722_s21 = scalar_lea.vmem %s1370_s10, %s719_s15  }
 0x1f6 PF: > { %1073 = sdivrem.u32 %s1468_s18, 14 }
 0x1f7   : > { %s881_s16 = smul.u32 112, %s1376_s26 }
 0x1f9   : > { %s727_s17 = scalar_lea.vmem %s1333_s6, %s881_s16 [#allocation2]   ;;  %s729_s20 = scalar_lea.vmem %s1370_s10, %s881_s16  }
 0x1ff   : > { %s1074_s23 = spop.drf %1073 }
 0x200   : > { %p883_p13 = scmp.le.s32.totalorder %s1074_s23, 0 }
 0x201   : > { %s1147_s24 = smov (!%p883_p13), %s729_s20   ;;  %s1151_s27 = smov (!%p883_p13), %s727_s17  }
 0x202   : > { %820 = sbr.rel (%p883_p13) target bundleno = 527 (0x20f), region = 135  ;;  %s1155_s28 = smov (!%p883_p13), 0  }
 0x203   : > { %s1159_s30 = smov (!%p883_p13), 0  }
 0x207 LB: >> { %v739_v21 = vld [vmem:[%s1153_s27] sm:$0xff]  ;;  %s741_s7 = sadd.s32 1, %s1157_s28  ;;  %s733_s30 = sadd.s32 1, %s1161_s30   ;;  %s1161_s30 = sphi %s1159_s30, %s733_s30   ;;  %s1157_s28 = sphi %s1155_s28, %s1156_s28   ;;  %s1153_s27 = sphi %s1151_s27, %s746_s27   ;;  %s1149_s24 = sphi %s1147_s24, %s747_s24  }
 0x208   : >> { %740 = vst [vmem:[%s1149_s24] sm:$0xff] %v739_v21  ;;  %p742_p0 = scmp.ge.s32.totalorder %s741_s7, %s1074_s23  ;;  %p732_p1 = scmp.ge.s32.totalorder %s733_s30, %s1074_s23 }
 0x20a   : >> { %s1472_s7 = smov (%p742_p0, %s741_s7), 0  ;;  %735 = sbr.rel (!%p732_p1) target bundleno = 519 (0x207), region = 141 }
 0x20b   : >> { %s884_s6 = sshll.u32 %s1472_s7, 3  ;;  %s1156_s28 = smov %s1472_s7  }
 0x20c   : >> { %s746_s27 = scalar_lea.vmem %s727_s17, %s884_s6 [#allocation2]   ;;  %s747_s24 = scalar_lea.vmem %s729_s20, %s884_s6  }
 0x20f PF: > { %p12_p2 = scmp.ge.s32.totalorder %s1210_s22, 4   ;;  %s1464_s18 = smov %s1125_s19 }
 0x210   : > { %s1465_s19 = smov %s1218_s25  ;;  %s1466_s20 = smov %s1210_s22 }
 0x211   :  { %14 = sbr.rel (!%p12_p2) target bundleno = 2 (0x2), region = 152 }

</bundles_post_ra>
